<compile_context>
chip_gen: v7x
topology: tpu7x:2x2x1
jax: 0.10.0
libtpu: 0.0.40
codegen_flags: <defaults>
</compile_context>

<pallas_src>
import math
import functools

import jax
import jax.numpy as jnp
import numpy as np
from jax.experimental import pallas as pl
from jax.experimental.pallas import tpu as pltpu


def _rup(x, m):
    return ((x + m - 1) // m) * m


def _cdiv(a, b):
    return -(-a // b)


def _ds(start, size, stride):
    return pl.ds(start, size) if stride == 1 else pl.ds(start, size, stride)


def _padded_vmem_bytes(shape, itemsize=4):
    """On-chip (VMEM) footprint of a block: last dim pads to 128 lanes,
    second-to-last to 8 sublanes (f32 accounting; upper bound for narrower dtypes)."""
    shape = tuple(shape)
    if len(shape) == 0:
        return itemsize
    if len(shape) == 1:
        shape = (1,) + shape
    major = 1
    for d in shape[:-2]:
        major *= int(d)
    return major * _rup(int(shape[-2]), 8) * _rup(int(shape[-1]), 128) * itemsize


def _physical_vmem_bytes():
    try:
        return int(pltpu.get_tpu_info().vmem_capacity_bytes)
    except Exception:
        return 64 << 20     # conservative: v7x per-core VMEM; v5e/v6e have 128 MiB


# ----------------------------------------------------------------------------
# Pallas kernel: per-tap accumulate (small Cin) or fused-K dot (Cin % 128 == 0).
# ----------------------------------------------------------------------------
def _conv_kernel(x_ref, w_ref, b_ref, o_ref, *, tile_ho, Wo, KH, KW,
                 stride, dilation, fuse_taps):
    # x_ref: (1, Hp_pad, Wp, Cin_p)  NHWC padded image, resident per batch element
    # w_ref: (KH*KW, Cin_p, Co)      per-tap weight slabs, (kh, kw, cin) order
    # b_ref: (1, Co)
    # o_ref: (1, tile_ho*Wo, Co)     output rows for this (batch, row-tile)
    sh, sw = stride
    dh, dw = dilation
    Cin_p = x_ref.shape[-1]
    Co = o_ref.shape[-1]
    tile_m = tile_ho * Wo
    T = KH * KW

    t = pl.program_id(1)
    row0 = pl.multiple_of(t * (tile_ho * sh), tile_ho * sh)

    def load_tap(kh, kw):
        # direct ref slice: (tile_ho, Wo, Cin_p); strided on H (major) / W (sublane)
        return x_ref[0,
                     _ds(row0 + kh * dh, tile_ho, sh),
                     _ds(kw * dw, Wo, sw),
                     :]

    if fuse_taps:
        # Cin_p is a multiple of 128: taps are lane-aligned, so the concat is
        # tile-aligned (cheap) and one MXU push with K = T*Cin_p beats T pushes.
        taps = [load_tap(kh, kw) for kh in range(KH) for kw in range(KW)]
        lhs = jnp.concatenate(taps, axis=-1).reshape(tile_m, T * Cin_p)
        acc = jnp.dot(lhs, w_ref[...].reshape(T * Cin_p, Co),
                      preferred_element_type=jnp.float32)
    else:
        # Small Cin: NO lane-offset concatenate (it forced masked stores and was
        # the critical path).  Accumulate tap matmuls instead; MXU time is
        # negligible at these K and loads stay ref slices with bounded live ranges.
        acc = None
        for kh in range(KH):
            for kw in range(KW):
                lhs = load_tap(kh, kw).reshape(tile_m, Cin_p)
                d = jnp.dot(lhs, w_ref[kh * KW + kw],
                            preferred_element_type=jnp.float32)
                acc = d if acc is None else acc + d

    acc = acc + b_ref[...]                     # broadcast (1, Co)
    o_ref[0] = acc.astype(o_ref.dtype)


# ----------------------------------------------------------------------------
# Output-row tile selection with padded on-chip VMEM accounting.
# ----------------------------------------------------------------------------
def _pick_tile(Ho, Wo, Co, Cin_p, Hp, Wp, sh, eff_h, fixed_bytes, cap_bytes,
               itemsize=4):
    """Preferences: >=2 tiles per image (pipelining + v7x row-split when N==1),
    MXU-friendly tile_m (multiple of 256, else 128), then biggest tile that fits
    (amortizes the ~0.35us per-grid-step overhead)."""

    def cost(t):
        n_t = _cdiv(Ho, t)
        ho_pad = n_t * t
        hp_pad = max(Hp, (ho_pad - 1) * sh + eff_h)
        tile_m = t * Wo
        in_img = 2 * _padded_vmem_bytes((hp_pad, Wp, Cin_p), itemsize)   # double-buffered
        out_tile = 2 * _padded_vmem_bytes((tile_m, Co), itemsize)        # double-buffered
        # in-kernel working set: one tap load + a few live f32 accumulators
        work = (_padded_vmem_bytes((t, Wo, Cin_p), itemsize)
                + 3 * _padded_vmem_bytes((tile_m, Co), 4))
        return fixed_bytes + in_img + out_tile + work, n_t, ho_pad, hp_pad

    # tile_m must be a multiple of 8 sublanes, or the single full-extent tile.
    aligned = [t for t in range(1, Ho + 1) if (t * Wo) % 8 == 0]
    if Ho not in aligned:
        aligned.append(Ho)
    fitting = [t for t in aligned if cost(t)[0] <= cap_bytes]
    pool = fitting if fitting else [min(aligned)]
    # TODO(synk): if even the smallest tile does not fit (huge images), switch to a
    # halo-row DMA scheme instead of keeping the whole padded image resident.

    def score(t):
        tile_m = t * Wo
        return (1 if _cdiv(Ho, t) >= 2 else 0,
                2 if tile_m % 256 == 0 else (1 if tile_m % 128 == 0 else 0),
                t)

    t = max(pool, key=score)
    need, n_t, ho_pad, hp_pad = cost(t)
    return t, n_t, ho_pad, hp_pad, need


# ----------------------------------------------------------------------------
# Wrapper
# ----------------------------------------------------------------------------
def conv2d_same_padding_pallas(x_nchw, weight_oihw, bias,
                               stride=(1, 1), dilation=(1, 1), groups=1):
    """Reproduces Conv2d_with_padding.conv2d_same_padding.

    x_nchw:      (N, Cin, H, W)      float32
    weight_oihw: (Cout, Cin, KH, KW) float32   (groups == 1)
    bias:        (Cout,)             float32
    """
    assert groups == 1   # TODO(synk): grouped conv not implemented in this kernel.
    N, Cin, H, W = x_nchw.shape
    Cout, _, KH, KW = weight_oihw.shape
    sh, sw = stride
    dh, dw = dilation

    # --- exact padding math from the PyTorch module.  NOTE: the original module
    # reuses the *row* formula for the columns (quirk of the source model for
    # non-square configs); reproduced on purpose - do not "fix".
    out_rows = (H + sh - 1) // sh
    padding_rows = max(0, (out_rows - 1) * sh + (KH - 1) * dh + 1 - H)
    rows_odd = padding_rows % 2 != 0
    ph = padding_rows // 2
    pad_top, pad_bot = ph, ph + int(rows_odd)
    pad_lft, pad_rgt = ph, ph + int(rows_odd)

    Hp = H + pad_top + pad_bot
    Wp = W + pad_lft + pad_rgt
    eff_h = dh * (KH - 1) + 1
    eff_w = dw * (KW - 1) + 1
    Ho = (Hp - eff_h) // sh + 1
    Wo = (Wp - eff_w) // sw + 1

    T = KH * KW
    Cin_p = _rup(Cin, 8)   # zero-pad channels to a sublane multiple (MXU-friendly K)
    Co = Cout              # no lane padding of Cout: HBM output bytes stay exact.
                           # (For Cout < 128 the VMEM stores are masked, but padded
                           #  writeback inflation dominated for these layers.)

    itemsize = int(jnp.dtype(x_nchw.dtype).itemsize)
    # TODO(synk): cast activations/weights to bf16 on v6e/v7x (f32 accumulate kept)
    # once accuracy is validated; halves VMEM/HBM traffic.

    # --- VMEM budget with padded on-chip sizes, capped per generation (~80% of
    # physical leaves Mosaic scratch headroom: ~51 MiB on v7x, ~100 MiB v5e/v6e).
    phys = _physical_vmem_bytes()
    vmem_cap = min(int(phys * 0.80), 100 << 20)
    fixed = (2 * _padded_vmem_bytes((T, Cin_p, Co), itemsize)   # weights (double-buffered)
             + 2 * _padded_vmem_bytes((1, Co), itemsize)        # bias
             + (8 << 20))                                       # Mosaic scratch headroom
    # TODO(synk): single-buffer the grid-invariant weights/bias (pl.Buffered(1)) to
    # reclaim one copy once that pipeline mode is validated on all target gens.

    tile_ho, n_t, Ho_pad, Hp_pad, need = _pick_tile(
        Ho, Wo, Co, Cin_p, Hp, Wp, sh, eff_h, fixed, vmem_cap, itemsize)
    tile_m = tile_ho * Wo
    vmem_limit = int(min(max(need, 32 << 20), vmem_cap))

    # --- glue: NCHW -> NHWC, SAME zero-pad, extra bottom rows so Ho pads to a
    # whole number of row tiles, channel pad to Cin_p (pure data movement).
    # TODO(synk): fold this pad/transpose (and the output transpose below) into the
    # kernel with a halo-aware index map to save an HBM pass on the activations.
    x_nhwc = jnp.transpose(x_nchw, (0, 2, 3, 1))
    x_pad = jnp.pad(
        x_nhwc,
        ((0, 0),
         (pad_top, pad_bot + (Hp_pad - Hp)),
         (pad_lft, pad_rgt),
         (0, Cin_p - Cin)))

    # per-tap weight slabs (KH*KW, Cin_p, Cout) in (kh, kw, cin) order.
    w3 = jnp.transpose(weight_oihw, (2, 3, 1, 0))             # (KH, KW, Cin, Cout)
    w3 = jnp.pad(w3, ((0, 0), (0, 0), (0, Cin_p - Cin), (0, 0)))
    w3 = w3.reshape(T, Cin_p, Co)
    b2 = bias.reshape(1, Co)

    fuse_taps = (Cin_p % 128 == 0)   # lane-aligned taps -> single fused-K MXU push

    kernel = functools.partial(
        _conv_kernel, tile_ho=tile_ho, Wo=Wo, KH=KH, KW=KW,
        stride=(sh, sw), dilation=(dh, dw), fuse_taps=fuse_taps)

    out_flat = pl.pallas_call(
        kernel,
        out_shape=jax.ShapeDtypeStruct((N, Ho_pad * Wo, Co), x_nchw.dtype),
        grid_spec=pltpu.PrefetchScalarGridSpec(
            num_scalar_prefetch=0,
            grid=(N, n_t),
            in_specs=[
                # whole padded image per batch element; block index is constant
                # across the row-tile axis so it is DMA'd once per image.
                pl.BlockSpec((1, Hp_pad, Wp, Cin_p), lambda n, t: (n, 0, 0, 0)),
                # grid-invariant weights / bias (constant block index -> one DMA).
                pl.BlockSpec((T, Cin_p, Co), lambda n, t: (0, 0, 0)),
                pl.BlockSpec((1, Co), lambda n, t: (0, 0)),
            ],
            out_specs=pl.BlockSpec((1, tile_m, Co), lambda n, t: (n, t, 0)),
        ),
        # Both axes parallel: with N >= 2 the batch axis feeds the two v7x cores
        # (one resident image each); with N == 1 the >=2 row tiles are split instead.
        compiler_params=pltpu.CompilerParams(
            dimension_semantics=("parallel", "parallel"),
            vmem_limit_bytes=vmem_limit),
    )(x_pad, w3, b2)

    # (N, Ho_pad*Wo, Cout) -> trim padded rows -> NCHW (single fused XLA copy).
    out = out_flat.reshape(N, Ho_pad, Wo, Co)[:, :Ho]
    return jnp.transpose(out, (0, 3, 1, 2))


# ----------------------------------------------------------------------------
# Deterministic parameter init mirroring _ConvNd.reset_parameters shapes/bounds.
# ----------------------------------------------------------------------------
def init_params(key, in_channels, out_channels, kernel_size, groups=1):
    kh, kw = kernel_size
    fan_in = (in_channels // groups) * kh * kw
    bound = 1.0 / math.sqrt(fan_in)
    k_w, k_b = jax.random.split(key)
    weight = jax.random.uniform(k_w,
                                (out_channels, in_channels // groups, kh, kw),
                                minval=-bound, maxval=bound, dtype=jnp.float32)
    bias = jax.random.uniform(k_b, (out_channels,),
                              minval=-bound, maxval=bound, dtype=jnp.float32)
    return weight, bias


if __name__ == "__main__":
    key = jax.random.PRNGKey(0)
    k_x, k_p = jax.random.split(key)

    # small shapes: batch=2, Cin=4, H=W=16, Cout=8, kernel=3x3, stride=1
    N, Cin, H, W = 2, 4, 16, 16
    Cout, Ksz = 8, 3
    stride, dilation, groups = (1, 1), (1, 1), 1

    x = jax.random.normal(k_x, (N, Cin, H, W), dtype=jnp.float32)
    weight, bias = init_params(k_p, Cin, Cout, (Ksz, Ksz), groups)

    out = conv2d_same_padding_pallas(x, weight, bias, stride, dilation, groups)
    out = jax.block_until_ready(out)

    # reference check: identical padding math, then a VALID XLA conv
    sh, sw = stride
    dh, dw = dilation
    out_rows = (H + sh - 1) // sh
    pr = max(0, (out_rows - 1) * sh + (Ksz - 1) * dh + 1 - H)
    rows_odd = pr % 2 != 0
    ph = pr // 2
    x_pad = jnp.pad(x, ((0, 0), (0, 0),
                        (ph, ph + int(rows_odd)), (ph, ph + int(rows_odd))))
    ref = jax.lax.conv_general_dilated(
        x_pad, weight, window_strides=stride, padding="VALID",
        rhs_dilation=dilation,
        dimension_numbers=("NCHW", "OIHW", "NCHW"))
    ref = ref + bias.reshape(1, Cout, 1, 1)

    np.testing.assert_allclose(np.asarray(out), np.asarray(ref),
                               rtol=1e-4, atol=1e-4)
    print("KERNEL_OK")
</pallas_src>

<mosaic_0001>
module attributes {stable_mosaic.version = 11 : i64} {
  func.func @_conv_kernel(%arg0: i32, %arg1: i32, %arg2: memref<1x18x18x8xf32, #tpu.memory_space<vmem>>, %arg3: memref<9x8x8xf32, #tpu.memory_space<vmem>>, %arg4: memref<1x8xf32, #tpu.memory_space<vmem>>, %arg5: memref<1x128x8xf32, #tpu.memory_space<vmem>>) attributes {dimension_semantics = [#tpu.dimension_semantics<parallel>, #tpu.dimension_semantics<parallel>], iteration_bounds = array<i64: 2, 2>, scalar_prefetch = 0 : i64, scratch_operands = 0 : i64, tpu.core_type = #tpu.core_type<tc>, window_params = [{transform_indices = @transform_0, window_bounds = array<i64: 1, 18, 18, 8>}, {pipeline_mode = #tpu.pipeline_mode<synchronous>, transform_indices = @transform_1, window_bounds = array<i64: 9, 8, 8>}, {pipeline_mode = #tpu.pipeline_mode<synchronous>, transform_indices = @transform_2, window_bounds = array<i64: 1, 8>}, {transform_indices = @transform_3, window_bounds = array<i64: 1, 128, 8>}]} {
    %c8_i32 = arith.constant 8 : i32
    %0 = arith.muli %arg1, %c8_i32 : i32
    %1 = tpu.assume_multiple %0, 8 : i32
    %c0_i32 = arith.constant 0 : i32
    %2 = arith.addi %1, %c0_i32 : i32
    %c0 = arith.constant 0 : index
    %3 = arith.index_cast %2 : i32 to index
    %c0_0 = arith.constant 0 : index
    %c0_1 = arith.constant 0 : index
    %4 = vector.load %arg2[%c0, %3, %c0_0, %c0_1] : memref<1x18x18x8xf32, #tpu.memory_space<vmem>>, vector<1x8x16x8xf32>
    %5 = vector.shape_cast %4 : vector<1x8x16x8xf32> to vector<8x16x8xf32>
    %6 = vector.shape_cast %5 : vector<8x16x8xf32> to vector<128x8xf32>
    %c0_2 = arith.constant 0 : index
    %c0_3 = arith.constant 0 : index
    %c0_4 = arith.constant 0 : index
    %7 = vector.load %arg3[%c0_2, %c0_3, %c0_4] : memref<9x8x8xf32, #tpu.memory_space<vmem>>, vector<1x8x8xf32>
    %8 = vector.shape_cast %7 : vector<1x8x8xf32> to vector<8x8xf32>
    %cst = arith.constant dense<0.000000e+00> : vector<128x8xf32>
    %9 = tpu.matmul %6, %8, %cst {dimension_numbers = #tpu.dot_dimension_numbers<[1], [0], [0], [1], [0, 0, 1, 1], [], []>} : vector<128x8xf32>, vector<8x8xf32>, vector<128x8xf32> -> vector<128x8xf32>
    %c0_i32_5 = arith.constant 0 : i32
    %10 = arith.addi %1, %c0_i32_5 : i32
    %c0_6 = arith.constant 0 : index
    %11 = arith.index_cast %10 : i32 to index
    %c1 = arith.constant 1 : index
    %c0_7 = arith.constant 0 : index
    %12 = vector.load %arg2[%c0_6, %11, %c1, %c0_7] : memref<1x18x18x8xf32, #tpu.memory_space<vmem>>, vector<1x8x16x8xf32>
    %13 = vector.shape_cast %12 : vector<1x8x16x8xf32> to vector<8x16x8xf32>
    %14 = vector.shape_cast %13 : vector<8x16x8xf32> to vector<128x8xf32>
    %c1_8 = arith.constant 1 : index
    %c0_9 = arith.constant 0 : index
    %c0_10 = arith.constant 0 : index
    %15 = vector.load %arg3[%c1_8, %c0_9, %c0_10] : memref<9x8x8xf32, #tpu.memory_space<vmem>>, vector<1x8x8xf32>
    %16 = vector.shape_cast %15 : vector<1x8x8xf32> to vector<8x8xf32>
    %cst_11 = arith.constant dense<0.000000e+00> : vector<128x8xf32>
    %17 = tpu.matmul %14, %16, %cst_11 {dimension_numbers = #tpu.dot_dimension_numbers<[1], [0], [0], [1], [0, 0, 1, 1], [], []>} : vector<128x8xf32>, vector<8x8xf32>, vector<128x8xf32> -> vector<128x8xf32>
    %18 = arith.addf %9, %17 : vector<128x8xf32>
    %c0_i32_12 = arith.constant 0 : i32
    %19 = arith.addi %1, %c0_i32_12 : i32
    %c0_13 = arith.constant 0 : index
    %20 = arith.index_cast %19 : i32 to index
    %c2 = arith.constant 2 : index
    %c0_14 = arith.constant 0 : index
    %21 = vector.load %arg2[%c0_13, %20, %c2, %c0_14] : memref<1x18x18x8xf32, #tpu.memory_space<vmem>>, vector<1x8x16x8xf32>
    %22 = vector.shape_cast %21 : vector<1x8x16x8xf32> to vector<8x16x8xf32>
    %23 = vector.shape_cast %22 : vector<8x16x8xf32> to vector<128x8xf32>
    %c2_15 = arith.constant 2 : index
    %c0_16 = arith.constant 0 : index
    %c0_17 = arith.constant 0 : index
    %24 = vector.load %arg3[%c2_15, %c0_16, %c0_17] : memref<9x8x8xf32, #tpu.memory_space<vmem>>, vector<1x8x8xf32>
    %25 = vector.shape_cast %24 : vector<1x8x8xf32> to vector<8x8xf32>
    %cst_18 = arith.constant dense<0.000000e+00> : vector<128x8xf32>
    %26 = tpu.matmul %23, %25, %cst_18 {dimension_numbers = #tpu.dot_dimension_numbers<[1], [0], [0], [1], [0, 0, 1, 1], [], []>} : vector<128x8xf32>, vector<8x8xf32>, vector<128x8xf32> -> vector<128x8xf32>
    %27 = arith.addf %18, %26 : vector<128x8xf32>
    %c1_i32 = arith.constant 1 : i32
    %28 = arith.addi %1, %c1_i32 : i32
    %c0_19 = arith.constant 0 : index
    %29 = arith.index_cast %28 : i32 to index
    %c0_20 = arith.constant 0 : index
    %c0_21 = arith.constant 0 : index
    %30 = vector.load %arg2[%c0_19, %29, %c0_20, %c0_21] : memref<1x18x18x8xf32, #tpu.memory_space<vmem>>, vector<1x8x16x8xf32>
    %31 = vector.shape_cast %30 : vector<1x8x16x8xf32> to vector<8x16x8xf32>
    %32 = vector.shape_cast %31 : vector<8x16x8xf32> to vector<128x8xf32>
    %c3 = arith.constant 3 : index
    %c0_22 = arith.constant 0 : index
    %c0_23 = arith.constant 0 : index
    %33 = vector.load %arg3[%c3, %c0_22, %c0_23] : memref<9x8x8xf32, #tpu.memory_space<vmem>>, vector<1x8x8xf32>
    %34 = vector.shape_cast %33 : vector<1x8x8xf32> to vector<8x8xf32>
    %cst_24 = arith.constant dense<0.000000e+00> : vector<128x8xf32>
    %35 = tpu.matmul %32, %34, %cst_24 {dimension_numbers = #tpu.dot_dimension_numbers<[1], [0], [0], [1], [0, 0, 1, 1], [], []>} : vector<128x8xf32>, vector<8x8xf32>, vector<128x8xf32> -> vector<128x8xf32>
    %36 = arith.addf %27, %35 : vector<128x8xf32>
    %c1_i32_25 = arith.constant 1 : i32
    %37 = arith.addi %1, %c1_i32_25 : i32
    %c0_26 = arith.constant 0 : index
    %38 = arith.index_cast %37 : i32 to index
    %c1_27 = arith.constant 1 : index
    %c0_28 = arith.constant 0 : index
    %39 = vector.load %arg2[%c0_26, %38, %c1_27, %c0_28] : memref<1x18x18x8xf32, #tpu.memory_space<vmem>>, vector<1x8x16x8xf32>
    %40 = vector.shape_cast %39 : vector<1x8x16x8xf32> to vector<8x16x8xf32>
    %41 = vector.shape_cast %40 : vector<8x16x8xf32> to vector<128x8xf32>
    %c4 = arith.constant 4 : index
    %c0_29 = arith.constant 0 : index
    %c0_30 = arith.constant 0 : index
    %42 = vector.load %arg3[%c4, %c0_29, %c0_30] : memref<9x8x8xf32, #tpu.memory_space<vmem>>, vector<1x8x8xf32>
    %43 = vector.shape_cast %42 : vector<1x8x8xf32> to vector<8x8xf32>
    %cst_31 = arith.constant dense<0.000000e+00> : vector<128x8xf32>
    %44 = tpu.matmul %41, %43, %cst_31 {dimension_numbers = #tpu.dot_dimension_numbers<[1], [0], [0], [1], [0, 0, 1, 1], [], []>} : vector<128x8xf32>, vector<8x8xf32>, vector<128x8xf32> -> vector<128x8xf32>
    %45 = arith.addf %36, %44 : vector<128x8xf32>
    %c1_i32_32 = arith.constant 1 : i32
    %46 = arith.addi %1, %c1_i32_32 : i32
    %c0_33 = arith.constant 0 : index
    %47 = arith.index_cast %46 : i32 to index
    %c2_34 = arith.constant 2 : index
    %c0_35 = arith.constant 0 : index
    %48 = vector.load %arg2[%c0_33, %47, %c2_34, %c0_35] : memref<1x18x18x8xf32, #tpu.memory_space<vmem>>, vector<1x8x16x8xf32>
    %49 = vector.shape_cast %48 : vector<1x8x16x8xf32> to vector<8x16x8xf32>
    %50 = vector.shape_cast %49 : vector<8x16x8xf32> to vector<128x8xf32>
    %c5 = arith.constant 5 : index
    %c0_36 = arith.constant 0 : index
    %c0_37 = arith.constant 0 : index
    %51 = vector.load %arg3[%c5, %c0_36, %c0_37] : memref<9x8x8xf32, #tpu.memory_space<vmem>>, vector<1x8x8xf32>
    %52 = vector.shape_cast %51 : vector<1x8x8xf32> to vector<8x8xf32>
    %cst_38 = arith.constant dense<0.000000e+00> : vector<128x8xf32>
    %53 = tpu.matmul %50, %52, %cst_38 {dimension_numbers = #tpu.dot_dimension_numbers<[1], [0], [0], [1], [0, 0, 1, 1], [], []>} : vector<128x8xf32>, vector<8x8xf32>, vector<128x8xf32> -> vector<128x8xf32>
    %54 = arith.addf %45, %53 : vector<128x8xf32>
    %c2_i32 = arith.constant 2 : i32
    %55 = arith.addi %1, %c2_i32 : i32
    %c0_39 = arith.constant 0 : index
    %56 = arith.index_cast %55 : i32 to index
    %c0_40 = arith.constant 0 : index
    %c0_41 = arith.constant 0 : index
    %57 = vector.load %arg2[%c0_39, %56, %c0_40, %c0_41] : memref<1x18x18x8xf32, #tpu.memory_space<vmem>>, vector<1x8x16x8xf32>
    %58 = vector.shape_cast %57 : vector<1x8x16x8xf32> to vector<8x16x8xf32>
    %59 = vector.shape_cast %58 : vector<8x16x8xf32> to vector<128x8xf32>
    %c6 = arith.constant 6 : index
    %c0_42 = arith.constant 0 : index
    %c0_43 = arith.constant 0 : index
    %60 = vector.load %arg3[%c6, %c0_42, %c0_43] : memref<9x8x8xf32, #tpu.memory_space<vmem>>, vector<1x8x8xf32>
    %61 = vector.shape_cast %60 : vector<1x8x8xf32> to vector<8x8xf32>
    %cst_44 = arith.constant dense<0.000000e+00> : vector<128x8xf32>
    %62 = tpu.matmul %59, %61, %cst_44 {dimension_numbers = #tpu.dot_dimension_numbers<[1], [0], [0], [1], [0, 0, 1, 1], [], []>} : vector<128x8xf32>, vector<8x8xf32>, vector<128x8xf32> -> vector<128x8xf32>
    %63 = arith.addf %54, %62 : vector<128x8xf32>
    %c2_i32_45 = arith.constant 2 : i32
    %64 = arith.addi %1, %c2_i32_45 : i32
    %c0_46 = arith.constant 0 : index
    %65 = arith.index_cast %64 : i32 to index
    %c1_47 = arith.constant 1 : index
    %c0_48 = arith.constant 0 : index
    %66 = vector.load %arg2[%c0_46, %65, %c1_47, %c0_48] : memref<1x18x18x8xf32, #tpu.memory_space<vmem>>, vector<1x8x16x8xf32>
    %67 = vector.shape_cast %66 : vector<1x8x16x8xf32> to vector<8x16x8xf32>
    %68 = vector.shape_cast %67 : vector<8x16x8xf32> to vector<128x8xf32>
    %c7 = arith.constant 7 : index
    %c0_49 = arith.constant 0 : index
    %c0_50 = arith.constant 0 : index
    %69 = vector.load %arg3[%c7, %c0_49, %c0_50] : memref<9x8x8xf32, #tpu.memory_space<vmem>>, vector<1x8x8xf32>
    %70 = vector.shape_cast %69 : vector<1x8x8xf32> to vector<8x8xf32>
    %cst_51 = arith.constant dense<0.000000e+00> : vector<128x8xf32>
    %71 = tpu.matmul %68, %70, %cst_51 {dimension_numbers = #tpu.dot_dimension_numbers<[1], [0], [0], [1], [0, 0, 1, 1], [], []>} : vector<128x8xf32>, vector<8x8xf32>, vector<128x8xf32> -> vector<128x8xf32>
    %72 = arith.addf %63, %71 : vector<128x8xf32>
    %c2_i32_52 = arith.constant 2 : i32
    %73 = arith.addi %1, %c2_i32_52 : i32
    %c0_53 = arith.constant 0 : index
    %74 = arith.index_cast %73 : i32 to index
    %c2_54 = arith.constant 2 : index
    %c0_55 = arith.constant 0 : index
    %75 = vector.load %arg2[%c0_53, %74, %c2_54, %c0_55] : memref<1x18x18x8xf32, #tpu.memory_space<vmem>>, vector<1x8x16x8xf32>
    %76 = vector.shape_cast %75 : vector<1x8x16x8xf32> to vector<8x16x8xf32>
    %77 = vector.shape_cast %76 : vector<8x16x8xf32> to vector<128x8xf32>
    %c8 = arith.constant 8 : index
    %c0_56 = arith.constant 0 : index
    %c0_57 = arith.constant 0 : index
    %78 = vector.load %arg3[%c8, %c0_56, %c0_57] : memref<9x8x8xf32, #tpu.memory_space<vmem>>, vector<1x8x8xf32>
    %79 = vector.shape_cast %78 : vector<1x8x8xf32> to vector<8x8xf32>
    %cst_58 = arith.constant dense<0.000000e+00> : vector<128x8xf32>
    %80 = tpu.matmul %77, %79, %cst_58 {dimension_numbers = #tpu.dot_dimension_numbers<[1], [0], [0], [1], [0, 0, 1, 1], [], []>} : vector<128x8xf32>, vector<8x8xf32>, vector<128x8xf32> -> vector<128x8xf32>
    %81 = arith.addf %72, %80 : vector<128x8xf32>
    %c0_59 = arith.constant 0 : index
    %c0_60 = arith.constant 0 : index
    %82 = vector.load %arg4[%c0_59, %c0_60] : memref<1x8xf32, #tpu.memory_space<vmem>>, vector<1x8xf32>
    %83 = vector.broadcast %82 : vector<1x8xf32> to vector<128x8xf32>
    %84 = arith.addf %81, %83 : vector<128x8xf32>
    %c0_61 = arith.constant 0 : index
    %c0_62 = arith.constant 0 : index
    %c0_63 = arith.constant 0 : index
    %85 = vector.load %arg5[%c0_61, %c0_62, %c0_63] : memref<1x128x8xf32, #tpu.memory_space<vmem>>, vector<1x128x8xf32>
    %86 = vector.shape_cast %85 : vector<1x128x8xf32> to vector<128x8xf32>
    %87 = vector.shape_cast %84 : vector<128x8xf32> to vector<1x128x8xf32>
    tpu.vector_store %arg5[%c0_61, %c0_62, %c0_63], %87 {strides = array<i32>} : memref<1x128x8xf32, #tpu.memory_space<vmem>>, vector<1x128x8xf32>,
    return
  }
  func.func @transform_0(%arg0: i32, %arg1: i32) -> (i32, i32, i32, i32) {
    %c0_i32 = arith.constant 0 : i32
    %c0_i32_0 = arith.constant 0 : i32
    %c0_i32_1 = arith.constant 0 : i32
    %c0_i32_2 = arith.constant 0 : i32
    return %arg0, %c0_i32, %c0_i32_0, %c0_i32_1 : i32, i32, i32, i32
  }
  func.func @transform_1(%arg0: i32, %arg1: i32) -> (i32, i32, i32) {
    %c0_i32 = arith.constant 0 : i32
    %c0_i32_0 = arith.constant 0 : i32
    %c0_i32_1 = arith.constant 0 : i32
    %c0_i32_2 = arith.constant 0 : i32
    return %c0_i32, %c0_i32_0, %c0_i32_1 : i32, i32, i32
  }
  func.func @transform_2(%arg0: i32, %arg1: i32) -> (i32, i32) {
    %c0_i32 = arith.constant 0 : i32
    %c0_i32_0 = arith.constant 0 : i32
    %c0_i32_1 = arith.constant 0 : i32
    return %c0_i32, %c0_i32_0 : i32, i32
  }
  func.func @transform_3(%arg0: i32, %arg1: i32) -> (i32, i32, i32) {
    %c0_i32 = arith.constant 0 : i32
    %c0_i32_0 = arith.constant 0 : i32
    return %arg0, %arg1, %c0_i32 : i32, i32, i32
  }
}

</mosaic_0001>

<bundles_post_ra>
// kernel: tpu_custom_call.1
= control target key start
LH: loop header
LB: loop body
LE: loop exit
PB: predicated region body
PF: predicated region fallthrough
CT: control target
= control target key end

     0   :  { %s3231_s12 = smov 0   ;;  %s3233_s13 = smov 0   ;;  %s3800_s0 = inlined_call_operand.vmem [shape: f32[2,18,18,8], index: 0, kind: input, shape index: {}]   ;;  %s3801_s1 = inlined_call_operand.vmem [shape: f32[9,8,8], index: 1, kind: input, shape index: {}]   ;;  %s3802_s2 = inlined_call_operand.vmem [shape: f32[1,8], index: 2, kind: input, shape index: {}]   ;;  %s3803_s3 = inlined_call_operand.vmem [shape: f32[2,256,8], index: 3, kind: output, shape index: {}]  }
   0x1   :  { %s3235_s14 = smov 0   ;;  %s3237_s15 = smov 0  }
   0x2   :  { %s3239_s16 = smov 0  }
   0x3 LB: > { %s22_s17 = sadd.s32 1, %s3201_s14  ;;  %s25_s18 = sadd.s32 1, %s3205_s15  ;;  %s3209_s16 = sphi %s3239_s16, %s13_s16   ;;  %s3205_s15 = sphi %s3237_s15, %s3807_s15   ;;  %s3201_s14 = sphi %s3235_s14, %s3806_s14   ;;  %s3197_s13 = sphi %s3233_s13, %s3805_s13   ;;  %s3193_s12 = sphi %s3231_s12, %s3804_s12  }
   0x4   : > { %p23_p0 = scmp.ge.s32.totalorder %s22_s17, 2  ;;  %p2351_p1 = scmp.ge.s32.totalorder %s3209_s16, 1 }
   0x5   : > { %p151_p2 = scmp.lt.s32.totalorder %s3209_s16, 5 }
   0x6   : > { %s3809_s17 = smov (%p23_p0, %s22_s17), 0  ;;  %s3811_s18 = smov (!%p23_p0, %s25_s18), %s3205_s15 }
   0x7   : > { %p152_p3 = pnand %p2351_p1, %p151_p2  ;;  %p27_p4 = scmp.ge.s32.totalorder %s3811_s18, 2 }
   0x8   : > { %v2358_v0 = vld [vmem:[%s3801_s1 + $0x8] sm:$0xff] (!%p152_p3)  ;;  %v3269_v1 = vld [vmem:[%s3801_s1 + $0x20] sm:$0xff] (!%p152_p3)  ;;  %p179_p5 = scmp.lt.s32.totalorder (!%p152_p3), %s3197_s13, 1  ;;  %s2357_s27 = smul.u32 (!%p152_p3), 192, %s3193_s12  ;;  %vm232_vm0 = vcmask (!%p152_p3), 64512   ;;  %v2527_v9 = vld [vmem:[%s3801_s1 + $0x30] sm:$0xff] (!%p152_p3) }
   0x9   : > { %s3813_s18 = smov (%p27_p4, %s3811_s18), 0  ;;  %155 = sbr.rel (%p152_p3) target bundleno = 381 (0x17d), region = 32 }
   0xa   : > { %v213_v2 = vld [vmem:[%s3801_s1] sm:$0xff] (!%p152_p3)  ;;  %2766 = vmatprep.subr.mxu1 (!%p152_p3), %v2358_v0  ;;  %2870 = vmatprep.subr.mxu0 (!%p152_p3), %v3269_v1  ;;  %v2492_v3 = vld [vmem:[%s3801_s1 + $0x28] sm:$0xff] (!%p152_p3)  ;;  %v3305_v10 = vld [vmem:[%s3801_s1 + $0x10] sm:$0xff] (!%p152_p3)  ;;  %s2353_s23 = sshll.u32 (!%p152_p3), %s3193_s12, 4 }
   0xb   : > { %2767 = vmatpush3.msra.mxu1 (!%p152_p3), %v2358_v0  ;;  %2871 = vmatpush3.msra.mxu0 (!%p152_p3), %v3269_v1  ;;  %v3364_v20 = vld [vmem:[%s3801_s1 + $0x38] sm:$0xff] (!%p152_p3)  ;;  %v2593_v51 = vld [vmem:[%s3801_s1 + $0x40] sm:$0xff] (!%p152_p3)  ;;  %p187_p6 = scmp.lt.s32.totalorder (!%p152_p3), %s2353_s23, 31 }
   0xc   : > { %2792 = vmatprep.subr.mxu1 (!%p152_p3), %v213_v2  ;;  %2896 = vmatprep.subr.mxu0 (!%p152_p3), %v2492_v3  ;;  %v2426_v37 = vld [vmem:[%s3801_s1 + $0x18] sm:$0xff] (!%p152_p3) }
  0x10   : > { %s3815_s13 = smov (!%p179_p5, %s3197_s13), 1  ;;  %s3817_s23 = smov (!%p187_p6, %s2353_s23), 31 }
  0x11   : > { %s3130_s28 = smul.u32 432, %s3815_s13  ;;  %s2354_s24 = sshll.u32 %s3815_s13, 5 }
  0x12   : > { %s190_s25 = sadd.s32 %s2354_s24, %s3817_s23 }
  0x13   : > { %s183_s4 = scalar_lea.vmem %s3800_s0, %s3130_s28  ;;  %s2355_s26 = sshll.u32 %s190_s25, 3 }
  0x14   : > { %s3286_s5 = scalar_lea.vmem %s183_s4, %s2357_s27  ;;  %s3735_s30 = scalar_lea.vmem %s3803_s3, %s2355_s26 }
  0x15   : > { %v214_v4 = vld [vmem:[%s3286_s5 + $0x1] sm:$0xff]  ;;  %v2443_v5 = vld [vmem:[%s3286_s5 + $0x19] sm:$0xff]  ;;  %v215_v6 = vld [vmem:[%s3286_s5 + $0x9] sm:$0xff] }
  0x16   : > { %2768 = vmatprep.mubr.msk.f32.mxu1 %vm232_vm0, %v214_v4  ;;  %2872 = vmatprep.mubr.msk.f32.mxu0 %vm232_vm0, %v2443_v5  ;;  %v2444_v7 = vld [vmem:[%s3286_s5 + $0x21] sm:$0xff]  ;;  %v3295_v8 = vld [vmem:[%s3286_s5 + $0x31] sm:$0xff]  ;;  %v3308_v11 = vld [vmem:[%s3286_s5 + $0x39] sm:$0xff] }
  0x17   : > { %2769 = vmatmul.mubr.msk.f32.vlgmr.msra.gmra.mrb[0].mxu1 %vm232_vm0, %v215_v6  ;;  %2873 = vmatmul.mubr.msk.f32.vlgmr.msra.gmra.mrb[0].mxu0 %vm232_vm0, %v2444_v7  ;;  %v3314_v12 = vld [vmem:[%s3286_s5 + $0x49] sm:$0xff]  ;;  %v3325_v13 = vld [vmem:[%s3286_s5 + $0x51] sm:$0xff]  ;;  %v3328_v14 = vld [vmem:[%s3286_s5 + $0x61] sm:$0xff] }
  0x18   : > { %2793 = vmatpush3.msra.mxu1 %v213_v2  ;;  %2897 = vmatpush3.msra.mxu0 %v2492_v3  ;;  %v3339_v15 = vld [vmem:[%s3286_s5 + $0x69] sm:$0xff]  ;;  %v3342_v16 = vld [vmem:[%s3286_s5 + $0x1a] sm:$0xff]  ;;  %v3359_v19 = vld [vmem:[%s3286_s5 + $0x32] sm:$0xff] }
  0x19   : > { %2771 = vmatprep.mubr.msk.f32.mxu1 %vm232_vm0, %v2443_v5  ;;  %2875 = vmatprep.mubr.msk.f32.mxu0 %vm232_vm0, %v3295_v8  ;;  %v3353_v17 = vld [vmem:[%s3286_s5 + $0x22] sm:$0xff]  ;;  %v3356_v18 = vld [vmem:[%s3286_s5 + $0x79] sm:$0xff]  ;;  %v3381_v23 = vld [vmem:[%s3286_s5 + $0x91] sm:$0xff] }
  0x1a   : > { %2922 = vmatprep.subr.mxu0 %v2527_v9  ;;  %2818 = vmatprep.subr.mxu1 %v3305_v10  ;;  %v3373_v21 = vld [vmem:[%s3286_s5 + $0x81] sm:$0xff]  ;;  %v3384_v24 = vld [vmem:[%s3286_s5 + $0x4a] sm:$0xff]  ;;  %v3396_v25 = vld [vmem:[%s3286_s5 + $0x99] sm:$0xff] }
  0x1b   : > { %2772 = vmatmul.mubr.msk.f32.gmra.mrb[2].mxu1 %vm232_vm0, %v2444_v7  ;;  %2876 = vmatmul.mubr.msk.f32.gmra.mrb[2].mxu0 %vm232_vm0, %v3308_v11  ;;  %v3376_v22 = vld [vmem:[%s3286_s5 + $0x3a] sm:$0xff]  ;;  %v3399_v26 = vld [vmem:[%s3286_s5 + $0x52] sm:$0xff]  ;;  %v3402_v27 = vld [vmem:[%s3286_s5 + $0xa9] sm:$0xff] }
  0x1c   : > { %2774 = vmatprep.mubr.msk.f32.mxu1 %vm232_vm0, %v3295_v8  ;;  %2878 = vmatprep.mubr.msk.f32.mxu0 %vm232_vm0, %v3314_v12  ;;  %v3405_v28 = vld [vmem:[%s3286_s5 + $0x62] sm:$0xff]  ;;  %v3416_v29 = vld [vmem:[%s3286_s5 + $0xb1] sm:$0xff]  ;;  %v3423_v32 = vld [vmem:[%s3286_s5 + $0x7a] sm:$0xff] }
  0x1d   : > { %v3419_v30 = vld [vmem:[%s3286_s5 + $0x6a] sm:$0xff]  ;;  %v197_v31 = vld [vmem:[%s3286_s5] sm:$0xff]  ;;  %v3437_v35 = vld [vmem:[%s3286_s5 + $0x18] sm:$0xff] }
  0x1e   : > { %v198_v33 = vld [vmem:[%s3286_s5 + $0x8] sm:$0xff]  ;;  %v3440_v36 = vld [vmem:[%s3286_s5 + $0x92] sm:$0xff]  ;;  %v3452_v38 = vld [vmem:[%s3286_s5 + $0x20] sm:$0xff] }
  0x1f   : > { %2775 = vmatmul.mubr.msk.f32.gmra.mrb[4].mxu1 %vm232_vm0, %v3308_v11  ;;  %2879 = vmatmul.mubr.msk.f32.gmra.mrb[4].mxu0 %vm232_vm0, %v3325_v13  ;;  %v3434_v34 = vld [vmem:[%s3286_s5 + $0x82] sm:$0xff]  ;;  %v3455_v39 = vld [vmem:[%s3286_s5 + $0x9a] sm:$0xff]  ;;  %v3460_v40 = vld [vmem:[%s3286_s5 + $0x30] sm:$0xff] }
  0x20   : > { %2777 = vmatprep.mubr.msk.f32.mxu1 %vm232_vm0, %v3314_v12  ;;  %2881 = vmatprep.mubr.msk.f32.mxu0 %vm232_vm0, %v3328_v14  ;;  %v3463_v41 = vld [vmem:[%s3286_s5 + $0xaa] sm:$0xff]  ;;  %v3474_v42 = vld [vmem:[%s3286_s5 + $0x38] sm:$0xff]  ;;  %v3483_v45 = vld [vmem:[%s3286_s5 + $0xc2] sm:$0xff] }
  0x21   : > { %v3477_v43 = vld [vmem:[%s3286_s5 + $0xb2] sm:$0xff]  ;;  %v3480_v44 = vld [vmem:[%s3286_s5 + $0x48] sm:$0xff]  ;;  %v3500_v48 = vld [vmem:[%s3286_s5 + $0x60] sm:$0xff] }
  0x22   : > { %v3494_v46 = vld [vmem:[%s3286_s5 + $0x50] sm:$0xff]  ;;  %v3511_v49 = vld [vmem:[%s3286_s5 + $0x68] sm:$0xff]  ;;  %v3514_v50 = vld [vmem:[%s3286_s5 + $0x78] sm:$0xff] }
  0x23   : > { %2778 = vmatmul.mubr.msk.f32.gmra.mrb[6].mxu1 %vm232_vm0, %v3325_v13  ;;  %2882 = vmatmul.mubr.msk.f32.gmra.mrb[6].mxu0 %vm232_vm0, %v3339_v15  ;;  %v3497_v47 = vld [vmem:[%s3286_s5 + $0xca] sm:$0xff]  ;;  %v3527_v52 = vld [vmem:[%s3286_s5 + $0x80] sm:$0xff]  ;;  %v3543_v54 = vld [vmem:[%s3286_s5 + $0x98] sm:$0xff] }
  0x24   : > { %2780 = vmatprep.mubr.msk.f32.mxu1 %vm232_vm0, %v3328_v14  ;;  %2898 = vmatprep.mubr.msk.f32.mxu0 %vm232_vm0, %v3342_v16  ;;  %v3532_v53 = vld [vmem:[%s3286_s5 + $0x90] sm:$0xff]  ;;  %v3546_v55 = vld [vmem:[%s3286_s5 + $0xa8] sm:$0xff]  ;;  %v3576_v59 = vld [vmem:[%s3286_s5 + $0xc0] sm:$0xff] }
  0x25   : > { %v3557_v56 = vld [vmem:[%s3286_s5 + $0xb0] sm:$0xff]  ;;  %v619_v57 = vld [vmem:[%s3286_s5 + $0x2] sm:$0xff]  ;;  %v2525_v61 = vld [vmem:[%s3286_s5 + $0xd8] sm:$0xff] }
  0x26   : > { %v620_v58 = vld [vmem:[%s3286_s5 + $0xa] sm:$0xff]  ;;  %v2526_v62 = vld [vmem:[%s3286_s5 + $0xe0] sm:$0xff] }
  0x27   : > { %2781 = vmatmul.mubr.msk.f32.gmra.mrb[8].mxu1 %vm232_vm0, %v3339_v15  ;;  %2899 = vmatmul.mubr.msk.f32.vlgmr.msra.gmra.mrb[0].mxu0 %vm232_vm0, %v3353_v17  ;;  %v2524_v60 = vld [vmem:[%s3286_s5 + $0xc8] sm:$0xff]  ;;  %v2591_v3 = vld [vmem:[%s3286_s5 + $0xda] sm:$0xff] }
  0x28   : > { %2923 = vmatpush3.msra.mxu0 %v2527_v9  ;;  %2783 = vmatprep.mubr.msk.f32.mxu1 %vm232_vm0, %v3356_v18  ;;  %v2556_v63 = vld [vmem:[%s3286_s5 + $0xc1] sm:$0xff]  ;;  %v2557_v0 = vld [vmem:[%s3286_s5 + $0xc9] sm:$0xff] }
  0x29   : > { %2901 = vmatprep.mubr.msk.f32.mxu0 %vm232_vm0, %v3359_v19  ;;  %2948 = vmatprep.subr.mxu0 %v3364_v20  ;;  %v2559_v2 = vld [vmem:[%s3286_s5 + $0xe1] sm:$0xff] }
  0x2a   : > { %v2592_v4 = vld [vmem:[%s3286_s5 + $0xe2] sm:$0xff] }
  0x2b   : > { %2784 = vmatmul.mubr.msk.f32.gmra.mrb[10].mxu1 %vm232_vm0, %v3373_v21  ;;  %2902 = vmatmul.mubr.msk.f32.gmra.mrb[2].mxu0 %vm232_vm0, %v3376_v22 }
  0x2c   : > { %2786 = vmatprep.mubr.msk.f32.mxu1 %vm232_vm0, %v3381_v23  ;;  %2904 = vmatprep.mubr.msk.f32.mxu0 %vm232_vm0, %v3384_v24 }
  0x2f   : > { %2787 = vmatmul.mubr.msk.f32.gmra.mrb[12].mxu1 %vm232_vm0, %v3396_v25  ;;  %2905 = vmatmul.mubr.msk.f32.gmra.mrb[4].mxu0 %vm232_vm0, %v3399_v26 }
  0x30   : > { %2789 = vmatprep.mubr.msk.f32.mxu1 %vm232_vm0, %v3402_v27  ;;  %2907 = vmatprep.mubr.msk.f32.mxu0 %vm232_vm0, %v3405_v28 }
  0x33   : > { %2790 = vmatmul.mubr.msk.f32.gmra.mrb[14].mxu1 %vm232_vm0, %v3416_v29  ;;  %2908 = vmatmul.mubr.msk.f32.gmra.mrb[6].mxu0 %vm232_vm0, %v3419_v30 }
  0x34   : > { %2794 = vmatprep.mubr.msk.f32.mxu1 %vm232_vm0, %v197_v31  ;;  %2910 = vmatprep.mubr.msk.f32.mxu0 %vm232_vm0, %v3423_v32 }
  0x37   : > { %2795 = vmatmul.mubr.msk.f32.vlgmr.msra.gmra.mrb[0].mxu1 %vm232_vm0, %v198_v33  ;;  %2911 = vmatmul.mubr.msk.f32.gmra.mrb[8].mxu0 %vm232_vm0, %v3434_v34 }
  0x38   : > { %2819 = vmatpush3.msra.mxu1 %v3305_v10  ;;  %2797 = vmatprep.mubr.msk.f32.mxu1 %vm232_vm0, %v3437_v35 }
  0x39   : > { %2913 = vmatprep.mubr.msk.f32.mxu0 %vm232_vm0, %v3440_v36  ;;  %2844 = vmatprep.subr.mxu1 %v2426_v37 }
  0x3b   : > { %2798 = vmatmul.mubr.msk.f32.gmra.mrb[2].mxu1 %vm232_vm0, %v3452_v38  ;;  %2914 = vmatmul.mubr.msk.f32.gmra.mrb[10].mxu0 %vm232_vm0, %v3455_v39 }
  0x3c   : > { %2800 = vmatprep.mubr.msk.f32.mxu1 %vm232_vm0, %v3460_v40  ;;  %2916 = vmatprep.mubr.msk.f32.mxu0 %vm232_vm0, %v3463_v41 }
  0x3f   : > { %2801 = vmatmul.mubr.msk.f32.gmra.mrb[4].mxu1 %vm232_vm0, %v3474_v42  ;;  %2917 = vmatmul.mubr.msk.f32.gmra.mrb[12].mxu0 %vm232_vm0, %v3477_v43 }
  0x40   : > { %2803 = vmatprep.mubr.msk.f32.mxu1 %vm232_vm0, %v3480_v44  ;;  %2919 = vmatprep.mubr.msk.f32.mxu0 %vm232_vm0, %v3483_v45 }
  0x43   : > { %2804 = vmatmul.mubr.msk.f32.gmra.mrb[6].mxu1 %vm232_vm0, %v3494_v46  ;;  %2920 = vmatmul.mubr.msk.f32.gmra.mrb[14].mxu0 %vm232_vm0, %v3497_v47 }
  0x44   : > { %2806 = vmatprep.mubr.msk.f32.mxu1 %vm232_vm0, %v3500_v48  ;;  %2924 = vmatprep.mubr.msk.f32.mxu0 %vm232_vm0, %v3460_v40 }
  0x47   : > { %2807 = vmatmul.mubr.msk.f32.gmra.mrb[8].mxu1 %vm232_vm0, %v3511_v49  ;;  %2925 = vmatmul.mubr.msk.f32.vlgmr.msra.gmra.mrb[0].mxu0 %vm232_vm0, %v3474_v42 }
  0x48   : > { %2949 = vmatpush3.msra.mxu0 %v3364_v20  ;;  %2809 = vmatprep.mubr.msk.f32.mxu1 %vm232_vm0, %v3514_v50 }
  0x49   : > { %2927 = vmatprep.mubr.msk.f32.mxu0 %vm232_vm0, %v3480_v44  ;;  %2974 = vmatprep.subr.mxu0 %v2593_v51 }
  0x4b   : > { %2810 = vmatmul.mubr.msk.f32.gmra.mrb[10].mxu1 %vm232_vm0, %v3527_v52  ;;  %2928 = vmatmul.mubr.msk.f32.gmra.mrb[2].mxu0 %vm232_vm0, %v3494_v46 }
  0x4c   : > { %2812 = vmatprep.mubr.msk.f32.mxu1 %vm232_vm0, %v3532_v53  ;;  %2930 = vmatprep.mubr.msk.f32.mxu0 %vm232_vm0, %v3500_v48 }
  0x4f   : > { %2813 = vmatmul.mubr.msk.f32.gmra.mrb[12].mxu1 %vm232_vm0, %v3543_v54  ;;  %2931 = vmatmul.mubr.msk.f32.gmra.mrb[4].mxu0 %vm232_vm0, %v3511_v49 }
  0x50   : > { %2815 = vmatprep.mubr.msk.f32.mxu1 %vm232_vm0, %v3546_v55  ;;  %2933 = vmatprep.mubr.msk.f32.mxu0 %vm232_vm0, %v3514_v50 }
  0x53   : > { %2816 = vmatmul.mubr.msk.f32.gmra.mrb[14].mxu1 %vm232_vm0, %v3557_v56  ;;  %2934 = vmatmul.mubr.msk.f32.gmra.mrb[6].mxu0 %vm232_vm0, %v3527_v52 }
  0x54   : > { %2820 = vmatprep.mubr.msk.f32.mxu1 %vm232_vm0, %v619_v57  ;;  %2936 = vmatprep.mubr.msk.f32.mxu0 %vm232_vm0, %v3532_v53 }
  0x57   : > { %2821 = vmatmul.mubr.msk.f32.vlgmr.msra.gmra.mrb[0].mxu1 %vm232_vm0, %v620_v58  ;;  %2937 = vmatmul.mubr.msk.f32.gmra.mrb[8].mxu0 %vm232_vm0, %v3543_v54 }
  0x58   : > { %2845 = vmatpush3.msra.mxu1 %v2426_v37  ;;  %2823 = vmatprep.mubr.msk.f32.mxu1 %vm232_vm0, %v3342_v16 }
  0x59   : > { %2939 = vmatprep.mubr.msk.f32.mxu0 %vm232_vm0, %v3546_v55  ;;  %3000 = vmatprep.subr.mxu1 %v3269_v1 }
  0x5b   : > { %2824 = vmatmul.mubr.msk.f32.gmra.mrb[2].mxu1 %vm232_vm0, %v3353_v17  ;;  %2940 = vmatmul.mubr.msk.f32.gmra.mrb[10].mxu0 %vm232_vm0, %v3557_v56 }
  0x5c   : > { %2826 = vmatprep.mubr.msk.f32.mxu1 %vm232_vm0, %v3359_v19  ;;  %2942 = vmatprep.mubr.msk.f32.mxu0 %vm232_vm0, %v3576_v59 }
  0x5f   : > { %2827 = vmatmul.mubr.msk.f32.gmra.mrb[4].mxu1 %vm232_vm0, %v3376_v22  ;;  %2943 = vmatmul.mubr.msk.f32.gmra.mrb[12].mxu0 %vm232_vm0, %v2524_v60 }
  0x60   : > { %2829 = vmatprep.mubr.msk.f32.mxu1 %vm232_vm0, %v3384_v24  ;;  %2945 = vmatprep.mubr.msk.f32.mxu0 %vm232_vm0, %v2525_v61 }
  0x63   : > { %2830 = vmatmul.mubr.msk.f32.gmra.mrb[6].mxu1 %vm232_vm0, %v3399_v26  ;;  %2946 = vmatmul.mubr.msk.f32.gmra.mrb[14].mxu0 %vm232_vm0, %v2526_v62 }
  0x64   : > { %2832 = vmatprep.mubr.msk.f32.mxu1 %vm232_vm0, %v3405_v28  ;;  %2950 = vmatprep.mubr.msk.f32.mxu0 %vm232_vm0, %v3295_v8 }
  0x67   : > { %2833 = vmatmul.mubr.msk.f32.gmra.mrb[8].mxu1 %vm232_vm0, %v3419_v30  ;;  %2951 = vmatmul.mubr.msk.f32.vlgmr.msra.gmra.mrb[0].mxu0 %vm232_vm0, %v3308_v11 }
  0x68   : > { %2975 = vmatpush3.msra.mxu0 %v2593_v51  ;;  %2835 = vmatprep.mubr.msk.f32.mxu1 %vm232_vm0, %v3423_v32 }
  0x69   : > { %2953 = vmatprep.mubr.msk.f32.mxu0 %vm232_vm0, %v3314_v12 }
  0x6b   : > { %2836 = vmatmul.mubr.msk.f32.gmra.mrb[10].mxu1 %vm232_vm0, %v3434_v34  ;;  %2954 = vmatmul.mubr.msk.f32.gmra.mrb[2].mxu0 %vm232_vm0, %v3325_v13 }
  0x6c   : > { %2838 = vmatprep.mubr.msk.f32.mxu1 %vm232_vm0, %v3440_v36  ;;  %2956 = vmatprep.mubr.msk.f32.mxu0 %vm232_vm0, %v3328_v14  ;;  %v3730_v14 = vld [vmem:[%s3802_s2] ss:$0 sm:$0xff] }
  0x6f   : > { %2839 = vmatmul.mubr.msk.f32.gmra.mrb[12].mxu1 %vm232_vm0, %v3455_v39  ;;  %2957 = vmatmul.mubr.msk.f32.gmra.mrb[4].mxu0 %vm232_vm0, %v3339_v15 }
  0x70   : > { %2841 = vmatprep.mubr.msk.f32.mxu1 %vm232_vm0, %v3463_v41  ;;  %2959 = vmatprep.mubr.msk.f32.mxu0 %vm232_vm0, %v3356_v18 }
  0x73   : > { %2842 = vmatmul.mubr.msk.f32.gmra.mrb[14].mxu1 %vm232_vm0, %v3477_v43  ;;  %2960 = vmatmul.mubr.msk.f32.gmra.mrb[6].mxu0 %vm232_vm0, %v3373_v21 }
  0x74   : > { %2846 = vmatprep.mubr.msk.f32.mxu1 %vm232_vm0, %v3437_v35  ;;  %2962 = vmatprep.mubr.msk.f32.mxu0 %vm232_vm0, %v3381_v23 }
  0x77   : > { %2847 = vmatmul.mubr.msk.f32.vlgmr.msra.gmra.mrb[0].mxu1 %vm232_vm0, %v3452_v38  ;;  %2963 = vmatmul.mubr.msk.f32.gmra.mrb[8].mxu0 %vm232_vm0, %v3396_v25 }
  0x78   : > { %3001 = vmatpush3.msra.mxu1 %v3269_v1  ;;  %2849 = vmatprep.mubr.msk.f32.mxu1 %vm232_vm0, %v3460_v40  ;;  %v2558_v1 = vld [vmem:[%s3286_s5 + $0xd9] sm:$0xff] }
  0x79   : > { %2965 = vmatprep.mubr.msk.f32.mxu0 %vm232_vm0, %v3402_v27 }
  0x7b   : > { %2850 = vmatmul.mubr.msk.f32.gmra.mrb[2].mxu1 %vm232_vm0, %v3474_v42  ;;  %2966 = vmatmul.mubr.msk.f32.gmra.mrb[10].mxu0 %vm232_vm0, %v3416_v29 }
  0x7c   : > { %2852 = vmatprep.mubr.msk.f32.mxu1 %vm232_vm0, %v3480_v44  ;;  %2968 = vmatprep.mubr.msk.f32.mxu0 %vm232_vm0, %v2556_v63 }
  0x7f   : > { %2853 = vmatmul.mubr.msk.f32.gmra.mrb[4].mxu1 %vm232_vm0, %v3494_v46  ;;  %2969 = vmatmul.mubr.msk.f32.gmra.mrb[12].mxu0 %vm232_vm0, %v2557_v0 }
  0x80   : > { %2855 = vmatprep.mubr.msk.f32.mxu1 %vm232_vm0, %v3500_v48  ;;  %2971 = vmatprep.mubr.msk.f32.mxu0 %vm232_vm0, %v2558_v1 }
  0x83   : > { %2856 = vmatmul.mubr.msk.f32.gmra.mrb[6].mxu1 %vm232_vm0, %v3511_v49  ;;  %2972 = vmatmul.mubr.msk.f32.gmra.mrb[14].mxu0 %vm232_vm0, %v2559_v2 }
  0x84   : > { %2858 = vmatprep.mubr.msk.f32.mxu1 %vm232_vm0, %v3514_v50  ;;  %2976 = vmatprep.mubr.msk.f32.mxu0 %vm232_vm0, %v3359_v19 }
  0x87   : > { %2859 = vmatmul.mubr.msk.f32.gmra.mrb[8].mxu1 %vm232_vm0, %v3527_v52  ;;  %2977 = vmatmul.mubr.msk.f32.vlgmr.msra.gmra.mrb[0].mxu0 %vm232_vm0, %v3376_v22 }
  0x88   : > { %2861 = vmatprep.mubr.msk.f32.mxu1 %vm232_vm0, %v3532_v53  ;;  %2979 = vmatprep.mubr.msk.f32.mxu0 %vm232_vm0, %v3384_v24 }
  0x8b   : > { %2862 = vmatmul.mubr.msk.f32.gmra.mrb[10].mxu1 %vm232_vm0, %v3543_v54  ;;  %2980 = vmatmul.mubr.msk.f32.gmra.mrb[2].mxu0 %vm232_vm0, %v3399_v26 }
  0x8c   : > { %2864 = vmatprep.mubr.msk.f32.mxu1 %vm232_vm0, %v3546_v55  ;;  %2982 = vmatprep.mubr.msk.f32.mxu0 %vm232_vm0, %v3405_v28 }
  0x8f   : > { %2865 = vmatmul.mubr.msk.f32.gmra.mrb[12].mxu1 %vm232_vm0, %v3557_v56  ;;  %2983 = vmatmul.mubr.msk.f32.gmra.mrb[4].mxu0 %vm232_vm0, %v3419_v30 }
  0x90   : > { %2867 = vmatprep.mubr.msk.f32.mxu1 %vm232_vm0, %v3576_v59  ;;  %2985 = vmatprep.mubr.msk.f32.mxu0 %vm232_vm0, %v3423_v32 }
  0x93   : > { %2868 = vmatmul.mubr.msk.f32.gmra.mrb[14].mxu1 %vm232_vm0, %v2524_v60  ;;  %2986 = vmatmul.mubr.msk.f32.gmra.mrb[6].mxu0 %vm232_vm0, %v3434_v34 }
  0x94   : > { %2884 = vmatprep.mubr.msk.f32.mxu1 %vm232_vm0, %v3356_v18  ;;  %2988 = vmatprep.mubr.msk.f32.mxu0 %vm232_vm0, %v3440_v36 }
  0x97   : > { %2885 = vmatmul.mubr.msk.f32.vlgmr.msra.gmra.mrb[8].mxu1 %vm232_vm0, %v3373_v21  ;;  %2989 = vmatmul.mubr.msk.f32.gmra.mrb[8].mxu0 %vm232_vm0, %v3455_v39 }
  0x98   : > { %2887 = vmatprep.mubr.msk.f32.mxu1 %vm232_vm0, %v3381_v23  ;;  %2991 = vmatprep.mubr.msk.f32.mxu0 %vm232_vm0, %v3463_v41 }
  0x9b   : > { %2888 = vmatmul.mubr.msk.f32.gmra.mrb[10].mxu1 %vm232_vm0, %v3396_v25  ;;  %2992 = vmatmul.mubr.msk.f32.gmra.mrb[10].mxu0 %vm232_vm0, %v3477_v43 }
  0x9c   : > { %2890 = vmatprep.mubr.msk.f32.mxu1 %vm232_vm0, %v3402_v27  ;;  %2994 = vmatprep.mubr.msk.f32.mxu0 %vm232_vm0, %v3483_v45 }
  0x9f   : > { %2891 = vmatmul.mubr.msk.f32.gmra.mrb[12].mxu1 %vm232_vm0, %v3416_v29  ;;  %2995 = vmatmul.mubr.msk.f32.gmra.mrb[12].mxu0 %vm232_vm0, %v3497_v47 }
  0xa0   : > { %2893 = vmatprep.mubr.msk.f32.mxu1 %vm232_vm0, %v2556_v63  ;;  %2997 = vmatprep.mubr.msk.f32.mxu0 %vm232_vm0, %v2591_v3 }
  0xa3   : > { %2894 = vmatmul.mubr.msk.f32.gmra.mrb[14].mxu1 %vm232_vm0, %v2557_v0  ;;  %2998 = vmatmul.mubr.msk.f32.gmra.mrb[14].mxu0 %vm232_vm0, %v2592_v4 }
 0x14a   : > { %v2848_v5 = vpop.f32.mrb[0].mxu1 }
 0x14b   : > { %v981_v6 = vpop.f32.mrb[1].mxu1 }
 0x14e   : > { %v2851_v7 = vpop.f32.mrb[2].mxu1 }
 0x14f   : > { %v991_v8 = vpop.f32.mrb[3].mxu1 }
 0x152   : > { %v2854_v9 = vpop.f32.mrb[4].mxu1 }
 0x153   : > { %v1001_v10 = vpop.f32.mrb[5].mxu1 }
 0x156   : > { %v2857_v11 = vpop.f32.mrb[6].mxu1 }
 0x157   : > { %v1011_v12 = vpop.f32.mrb[7].mxu1 }
 0x15a   : > { %v2978_v13 = vpop.f32.mrb[0].mxu0 }
 0x15b   : > { %v3002_v15 = vadd.f32 %v2978_v13, %v2848_v5  ;;  %v2119_v16 = vpop.f32.mrb[1].mxu0 }
 0x15c   : > { %v3003_v17 = vadd.f32 %v2119_v16, %v981_v6 }
 0x15d   : > { %v2222_v18 = vadd.f32 %v3002_v15, %v3730_v14 }
 0x15e   : > { %v2221_v19 = vadd.f32 %v3003_v17, %v3730_v14  ;;  %v2981_v20 = vpop.f32.mrb[2].mxu0 }
 0x15f   : > { %2238 = vst.msk [vmem:[%s3735_s30 + $0x8] sm:$0xff] %vm232_vm0, %v2222_v18  ;;  %v3004_v21 = vadd.f32 %v2981_v20, %v2851_v7  ;;  %v2129_v22 = vpop.f32.mrb[3].mxu0 }
 0x160   : > { %2237 = vst.msk [vmem:[%s3735_s30] sm:$0xff] %vm232_vm0, %v2221_v19  ;;  %v3005_v23 = vadd.f32 %v2129_v22, %v991_v8 }
 0x161   : > { %v2224_v24 = vadd.f32 %v3004_v21, %v3730_v14 }
 0x162   : > { %v2223_v25 = vadd.f32 %v3005_v23, %v3730_v14  ;;  %v2984_v26 = vpop.f32.mrb[4].mxu0 }
 0x163   : > { %2240 = vst.msk [vmem:[%s3735_s30 + $0x18] sm:$0xff] %vm232_vm0, %v2224_v24  ;;  %v3006_v27 = vadd.f32 %v2984_v26, %v2854_v9  ;;  %v2139_v28 = vpop.f32.mrb[5].mxu0 }
 0x164   : > { %2239 = vst.msk [vmem:[%s3735_s30 + $0x10] sm:$0xff] %vm232_vm0, %v2223_v25  ;;  %v3007_v29 = vadd.f32 %v2139_v28, %v1001_v10 }
 0x165   : > { %v2226_v30 = vadd.f32 %v3006_v27, %v3730_v14 }
 0x166   : > { %v2225_v31 = vadd.f32 %v3007_v29, %v3730_v14  ;;  %v2987_v32 = vpop.f32.mrb[6].mxu0 }
 0x167   : > { %2242 = vst.msk [vmem:[%s3735_s30 + $0x28] sm:$0xff] %vm232_vm0, %v2226_v30  ;;  %v3008_v33 = vadd.f32 %v2987_v32, %v2857_v11  ;;  %v2149_v34 = vpop.f32.mrb[7].mxu0 }
 0x168   : > { %2241 = vst.msk [vmem:[%s3735_s30 + $0x20] sm:$0xff] %vm232_vm0, %v2225_v31  ;;  %v3009_v35 = vadd.f32 %v2149_v34, %v1011_v12 }
 0x169   : > { %v2228_v36 = vadd.f32 %v3008_v33, %v3730_v14 }
 0x16a   : > { %v2227_v37 = vadd.f32 %v3009_v35, %v3730_v14  ;;  %v2886_v38 = vpop.f32.mrb[8].mxu1  ;;  %v2990_v39 = vpop.f32.mrb[8].mxu0 }
 0x16b   : > { %2244 = vst.msk [vmem:[%s3735_s30 + $0x38] sm:$0xff] %vm232_vm0, %v2228_v36  ;;  %v3010_v40 = vadd.f32 %v2990_v39, %v2886_v38  ;;  %v1248_v41 = vpop.f32.mrb[9].mxu1  ;;  %v2159_v42 = vpop.f32.mrb[9].mxu0 }
 0x16c   : > { %2243 = vst.msk [vmem:[%s3735_s30 + $0x30] sm:$0xff] %vm232_vm0, %v2227_v37  ;;  %v3011_v43 = vadd.f32 %v2159_v42, %v1248_v41 }
 0x16d   : > { %v2230_v44 = vadd.f32 %v3010_v40, %v3730_v14 }
 0x16e   : > { %v2229_v45 = vadd.f32 %v3011_v43, %v3730_v14  ;;  %v2889_v46 = vpop.f32.mrb[10].mxu1  ;;  %v2993_v47 = vpop.f32.mrb[10].mxu0 }
 0x16f   : > { %2246 = vst.msk [vmem:[%s3735_s30 + $0x48] sm:$0xff] %vm232_vm0, %v2230_v44  ;;  %v3012_v48 = vadd.f32 %v2993_v47, %v2889_v46  ;;  %v1258_v49 = vpop.f32.mrb[11].mxu1  ;;  %v2169_v50 = vpop.f32.mrb[11].mxu0 }
 0x170   : > { %2245 = vst.msk [vmem:[%s3735_s30 + $0x40] sm:$0xff] %vm232_vm0, %v2229_v45  ;;  %v3013_v51 = vadd.f32 %v2169_v50, %v1258_v49 }
 0x171   : > { %v2232_v52 = vadd.f32 %v3012_v48, %v3730_v14 }
 0x172   : > { %v2231_v53 = vadd.f32 %v3013_v51, %v3730_v14  ;;  %v2892_v54 = vpop.f32.mrb[12].mxu1  ;;  %v2996_v55 = vpop.f32.mrb[12].mxu0 }
 0x173   : > { %2248 = vst.msk [vmem:[%s3735_s30 + $0x58] sm:$0xff] %vm232_vm0, %v2232_v52  ;;  %v3014_v56 = vadd.f32 %v2996_v55, %v2892_v54  ;;  %v1268_v57 = vpop.f32.mrb[13].mxu1  ;;  %v2179_v58 = vpop.f32.mrb[13].mxu0 }
 0x174   : > { %2247 = vst.msk [vmem:[%s3735_s30 + $0x50] sm:$0xff] %vm232_vm0, %v2231_v53  ;;  %v3015_v59 = vadd.f32 %v2179_v58, %v1268_v57 }
 0x175   : > { %v2234_v60 = vadd.f32 %v3014_v56, %v3730_v14 }
 0x176   : > { %v2233_v61 = vadd.f32 %v3015_v59, %v3730_v14  ;;  %v2895_v62 = vpop.f32.mrb[14].mxu1  ;;  %v2999_v63 = vpop.f32.mrb[14].mxu0 }
 0x177   : > { %2250 = vst.msk [vmem:[%s3735_s30 + $0x68] sm:$0xff] %vm232_vm0, %v2234_v60  ;;  %v3016_v0 = vadd.f32 %v2999_v63, %v2895_v62  ;;  %v1278_v1 = vpop.f32.mrb[15].mxu1  ;;  %v2189_v2 = vpop.f32.mrb[15].mxu0 }
 0x178   : > { %2249 = vst.msk [vmem:[%s3735_s30 + $0x60] sm:$0xff] %vm232_vm0, %v2233_v61  ;;  %v3017_v3 = vadd.f32 %v2189_v2, %v1278_v1 }
 0x179   : > { %v2236_v4 = vadd.f32 %v3016_v0, %v3730_v14 }
 0x17a   : > { %v2235_v5 = vadd.f32 %v3017_v3, %v3730_v14 }
 0x17b   : > { %2252 = vst.msk [vmem:[%s3735_s30 + $0x78] sm:$0xff] %vm232_vm0, %v2236_v4 }
 0x17c   : > { %2251 = vst.msk [vmem:[%s3735_s30 + $0x70] sm:$0xff] %vm232_vm0, %v2235_v5 }
 0x17d PF: > { %s13_s16 = sadd.s32 1, %s3209_s16   ;;  %s3804_s12 = smov %s3201_s14 }
 0x17e   : > { %p10_p7 = scmp.ge.s32.totalorder %s13_s16, 6   ;;  %s3805_s13 = smov %s3205_s15 }
 0x17f   : > { %s3806_s14 = smov %s3809_s17  ;;  %s3807_s15 = smov %s3813_s18 }
 0x180   :  { %12 = sbr.rel (!%p10_p7) target bundleno = 3 (0x3), region = 73 }

</bundles_post_ra>
